<compile_context>
chip_gen: v7x
topology: tpu7x:2x2x1
jax: 0.10.0
libtpu: 0.0.40
codegen_flags: <defaults>
</compile_context>

<pallas_src>
import jax
import jax.numpy as jnp
from jax.experimental import pallas as pl
from jax.experimental.pallas import tpu as pltpu


def linreg_kernel(w_ref, x_ref, o_ref, acc_ref):
    """Accumulate one (TB, TN) output tile over one K block.

    w_ref:   (1, TK)      f32  weight row block
    x_ref:   (TB, TK, TN) f32  TB batch rows, lane-dense TN sample columns
    o_ref:   (TB, TN)     f32  output tile (written on the last K step)
    acc_ref: (TB, TN)     f32  VMEM accumulator (persists across the K axis)
    """
    ki = pl.program_id(2)

    @pl.when(ki == 0)
    def _init():
        acc_ref[...] = jnp.zeros_like(acc_ref)

    w = w_ref[...]  # (1, TK), loaded once per step
    # Route the K-reduction through the MXU: one skinny (1,TK)x(TK,TN) matmul per
    # batch row, statically unrolled (TB is small). The kernel is HBM-bound, so MXU
    # occupancy is irrelevant, but this keeps the VPU/XLU free and avoids building
    # any (TB,TK,TN)-sized vector intermediate (no vreg spills).
    for b in range(x_ref.shape[0]):
        acc_ref[b:b + 1, :] += jnp.dot(
            w, x_ref[b], preferred_element_type=jnp.float32)

    @pl.when(ki == pl.num_programs(2) - 1)
    def _finish():
        o_ref[...] = acc_ref[...].astype(o_ref.dtype)


def _vmem_capacity_bytes():
    """Per-core VMEM capacity; conservative (v7x-sized) fallback if unavailable."""
    try:
        cap = getattr(pltpu.get_tpu_info(), "vmem_capacity_bytes", None)
        if cap:
            return int(cap)
    except Exception:
        pass
    return 64 * 1024 * 1024


def _select_tiles(B, K, N, itemsize, x_buffer_budget_bytes):
    """Pick (tb, tk, tn) so blocks are sublane/lane dense and the double-buffered
    x tile fits the budget. All tiles divide their dim exactly (or equal it)."""
    # Lane-dense N tile (multiple of 128), full-N escape hatch for small/odd N.
    tn = next((c for c in (1024, 512, 256, 128) if N % c == 0), N)
    # Sublane-dense batch tile (multiple of 8), full-B escape hatch otherwise.
    tb = next((c for c in (64, 32, 16, 8) if B % c == 0), B)
    # Full K by default; block K only when needed for VMEM. A K block must be a
    # multiple of 128 so the (1, TK) weight row stays block-legal.
    # TODO(synk): masked/ragged K blocks for huge K that is not a multiple of 128.
    tk = K

    def per_buf(tb_, tk_, tn_):
        return tb_ * tk_ * tn_ * itemsize

    # Shrink order: K first (free thanks to the accumulator axis), then N (stays
    # lane-dense >=128), then batch (stays sublane-dense >=8 where possible).
    while 2 * per_buf(tb, tk, tn) > x_buffer_budget_bytes:
        nk = next((c for c in (2048, 1024, 512, 256, 128) if c < tk and K % c == 0), None)
        if nk is not None:
            tk = nk
            continue
        if tn >= 256 and tn % 2 == 0 and (tn // 2) % 128 == 0 and N % (tn // 2) == 0:
            tn //= 2
            continue
        if tb >= 16 and tb % 2 == 0 and (tb // 2) % 8 == 0:
            tb //= 2
            continue
        if tb > 1 and tb % 2 == 0:
            tb //= 2
            continue
        break  # smallest legal tiling; rely on vmem_limit_bytes for headroom

    # v7x has 2 TensorCores: make sure there are >=2 steps along a parallel axis
    # when the problem can be split without losing lane/sublane density.
    if (B // tb) * (N // tn) < 2:
        if tn >= 256 and N % (tn // 2) == 0 and (tn // 2) % 128 == 0:
            tn //= 2
        elif tb >= 16 and (tb // 2) % 8 == 0:
            tb //= 2
        # else: problem too small to split cleanly; one step is fine.
    return tb, tk, tn


def linear_regression_forward(W, x, *, x_buffer_budget_bytes=None):
    """W: (1, K) f32, x: (B, K, N) f32 -> (B, N) f32  (== matmul(W, x).squeeze(1))."""
    B, K, N = x.shape
    assert W.shape == (1, K)

    # Stream operands in f32 (stored dtype): a wrapper-side cast of x would add a
    # full extra HBM read+write pass to a purely bandwidth-bound kernel.
    W = W.astype(jnp.float32)
    x = x.astype(jnp.float32)
    itemsize = 4

    vmem_cap = _vmem_capacity_bytes()
    if x_buffer_budget_bytes is None:
        # ~1/4 of VMEM for the double-buffered x stream: ~16 MiB on v7x (64 MiB/TC),
        # ~32 MiB on v5e/v6e (128 MiB).
        x_buffer_budget_bytes = vmem_cap // 4
    tb, tk, tn = _select_tiles(B, K, N, itemsize, x_buffer_budget_bytes)

    grid = (B // tb, N // tn, K // tk)

    cost = pl.CostEstimate(
        flops=2 * B * K * N,
        bytes_accessed=B * K * N * itemsize + B * N * 4 + K * 4,
        transcendentals=0,
    )

    # NOTE: if xprof shows DMA gaps at step boundaries on v7x, the x BlockSpec can
    # take pipeline_mode=pl.Buffered(3) (VMEM headroom permitting).
    return pl.pallas_call(
        linreg_kernel,
        out_shape=jax.ShapeDtypeStruct((B, N), jnp.float32),
        grid_spec=pltpu.PrefetchScalarGridSpec(
            num_scalar_prefetch=0,
            grid=grid,
            in_specs=[
                pl.BlockSpec((1, tk), lambda bi, ni, ki: (0, ki)),            # weight row block
                pl.BlockSpec((tb, tk, tn), lambda bi, ni, ki: (bi, ki, ni)),  # x tile
            ],
            out_specs=pl.BlockSpec((tb, tn), lambda bi, ni, ki: (bi, ni)),    # lane-dense out tile
            scratch_shapes=[pltpu.VMEM((tb, tn), jnp.float32)],               # f32 accumulator
        ),
        compiler_params=pltpu.CompilerParams(
            dimension_semantics=("parallel", "parallel", "arbitrary"),
            vmem_limit_bytes=min(int(vmem_cap * 3 // 4), 100 * 1024 * 1024),
        ),
        cost_estimate=cost,
    )(W, x)


def _reference_f32(W, x):
    # Exact-f32 reference (broadcast-mul + sum; no implicit low-precision matmul).
    B, K, N = x.shape
    return jnp.sum(W.reshape(1, K, 1).astype(jnp.float32) * x.astype(jnp.float32), axis=1)


if __name__ == "__main__":
    key = jax.random.PRNGKey(0)

    def run_check(B, K, N, key, **kw):
        k_w, k_x = jax.random.split(key)
        # Mirrors torch.randn((1, input_size)) parameter init.
        W = jax.random.normal(k_w, (1, K), dtype=jnp.float32)
        x = jax.random.normal(k_x, (B, K, N), dtype=jnp.float32)

        out = linear_regression_forward(W, x, **kw)
        jax.block_until_ready(out)
        assert out.shape == (B, N)

        ref = _reference_f32(W, x)
        # Tolerance leaves room for MXU pass-reduced f32 accumulation order; real
        # indexing/reduction bugs produce O(sqrt(K)) errors and still fail this.
        assert jnp.allclose(out, ref, atol=5e-2, rtol=5e-2), (
            "mismatch vs f32 reference, max abs err = "
            f"{float(jnp.max(jnp.abs(out - ref)))}")

    k1, k2, k3 = jax.random.split(key, 3)
    # Small shape consistent with the module: batch=2, input_size=32, n_points=16.
    run_check(B=2, K=32, N=16, key=k1)
    # Lane/sublane-dense shape exercising a multi-step (parallel x parallel) grid.
    run_check(B=8, K=64, N=384, key=k2)
    # Tight budget forces K-blocking (tk < K): exercises the accumulator K axis.
    run_check(B=16, K=256, N=512, key=k3, x_buffer_budget_bytes=2 * 1024 * 1024)

    print("KERNEL_OK")
</pallas_src>

<mosaic_0001>
module attributes {stable_mosaic.version = 11 : i64} {
  func.func @linreg_kernel(%arg0: i32, %arg1: i32, %arg2: i32, %arg3: memref<1x32xf32, #tpu.memory_space<vmem>>, %arg4: memref<2x32x16xf32, #tpu.memory_space<vmem>>, %arg5: memref<2x16xf32, #tpu.memory_space<vmem>>, %arg6: memref<2x16xf32, #tpu.memory_space<vmem>>) attributes {dimension_semantics = [#tpu.dimension_semantics<parallel>, #tpu.dimension_semantics<parallel>, #tpu.dimension_semantics<arbitrary>], iteration_bounds = array<i64: 1, 1, 1>, scalar_prefetch = 0 : i64, scratch_operands = 1 : i64, tpu.core_type = #tpu.core_type<tc>, window_params = [{transform_indices = @transform_0, window_bounds = array<i64: 1, 32>}, {transform_indices = @transform_1, window_bounds = array<i64: 2, 32, 16>}, {transform_indices = @transform_2, window_bounds = array<i64: 2, 16>}]} {
    %c0_i32 = arith.constant 0 : i32
    %0 = arith.cmpi eq, %arg2, %c0_i32 : i32
    %1 = arith.extui %0 : i1 to i32
    %c0_i32_0 = arith.constant 0 : i32
    %2 = arith.cmpi ne, %1, %c0_i32_0 : i32
    scf.if %2 {
      %cst_18 = arith.constant 0.000000e+00 : f32
      %19 = vector.broadcast %cst_18 : f32 to vector<2x16xf32>
      %c0_19 = arith.constant 0 : index
      %c0_20 = arith.constant 0 : index
      %20 = vector.load %arg6[%c0_19, %c0_20] : memref<2x16xf32, #tpu.memory_space<vmem>>, vector<2x16xf32>
      tpu.vector_store %arg6[%c0_19, %c0_20], %19 {strides = array<i32>} : memref<2x16xf32, #tpu.memory_space<vmem>>, vector<2x16xf32>,
    } else {
    }
    %c0 = arith.constant 0 : index
    %c0_1 = arith.constant 0 : index
    %3 = vector.load %arg3[%c0, %c0_1] : memref<1x32xf32, #tpu.memory_space<vmem>>, vector<1x32xf32>
    %c0_2 = arith.constant 0 : index
    %c0_3 = arith.constant 0 : index
    %4 = vector.load %arg6[%c0_2, %c0_3] : memref<2x16xf32, #tpu.memory_space<vmem>>, vector<1x16xf32>
    %c0_4 = arith.constant 0 : index
    %c0_5 = arith.constant 0 : index
    %c0_6 = arith.constant 0 : index
    %5 = vector.load %arg4[%c0_4, %c0_5, %c0_6] : memref<2x32x16xf32, #tpu.memory_space<vmem>>, vector<1x32x16xf32>
    %6 = vector.shape_cast %5 : vector<1x32x16xf32> to vector<32x16xf32>
    %cst = arith.constant dense<0.000000e+00> : vector<1x16xf32>
    %7 = tpu.matmul %3, %6, %cst {dimension_numbers = #tpu.dot_dimension_numbers<[1], [0], [0], [1], [0, 0, 1, 1], [], []>} : vector<1x32xf32>, vector<32x16xf32>, vector<1x16xf32> -> vector<1x16xf32>
    %8 = arith.addf %4, %7 : vector<1x16xf32>
    %c0_7 = arith.constant 0 : index
    %c0_8 = arith.constant 0 : index
    %9 = vector.load %arg6[%c0_7, %c0_8] : memref<2x16xf32, #tpu.memory_space<vmem>>, vector<1x16xf32>
    tpu.vector_store %arg6[%c0_7, %c0_8], %8 {strides = array<i32>} : memref<2x16xf32, #tpu.memory_space<vmem>>, vector<1x16xf32>,
    %c1 = arith.constant 1 : index
    %c0_9 = arith.constant 0 : index
    %10 = vector.load %arg6[%c1, %c0_9] : memref<2x16xf32, #tpu.memory_space<vmem>>, vector<1x16xf32>
    %c1_10 = arith.constant 1 : index
    %c0_11 = arith.constant 0 : index
    %c0_12 = arith.constant 0 : index
    %11 = vector.load %arg4[%c1_10, %c0_11, %c0_12] : memref<2x32x16xf32, #tpu.memory_space<vmem>>, vector<1x32x16xf32>
    %12 = vector.shape_cast %11 : vector<1x32x16xf32> to vector<32x16xf32>
    %cst_13 = arith.constant dense<0.000000e+00> : vector<1x16xf32>
    %13 = tpu.matmul %3, %12, %cst_13 {dimension_numbers = #tpu.dot_dimension_numbers<[1], [0], [0], [1], [0, 0, 1, 1], [], []>} : vector<1x32xf32>, vector<32x16xf32>, vector<1x16xf32> -> vector<1x16xf32>
    %14 = arith.addf %10, %13 : vector<1x16xf32>
    %c1_14 = arith.constant 1 : index
    %c0_15 = arith.constant 0 : index
    %15 = vector.load %arg6[%c1_14, %c0_15] : memref<2x16xf32, #tpu.memory_space<vmem>>, vector<1x16xf32>
    tpu.vector_store %arg6[%c1_14, %c0_15], %14 {strides = array<i32>} : memref<2x16xf32, #tpu.memory_space<vmem>>, vector<1x16xf32>,
    %c0_i32_16 = arith.constant 0 : i32
    %16 = arith.cmpi eq, %arg2, %c0_i32_16 : i32
    %17 = arith.extui %16 : i1 to i32
    %c0_i32_17 = arith.constant 0 : i32
    %18 = arith.cmpi ne, %17, %c0_i32_17 : i32
    scf.if %18 {
      %c0_18 = arith.constant 0 : index
      %c0_19 = arith.constant 0 : index
      %19 = vector.load %arg6[%c0_18, %c0_19] : memref<2x16xf32, #tpu.memory_space<vmem>>, vector<2x16xf32>
      %c0_20 = arith.constant 0 : index
      %c0_21 = arith.constant 0 : index
      %20 = vector.load %arg5[%c0_20, %c0_21] : memref<2x16xf32, #tpu.memory_space<vmem>>, vector<2x16xf32>
      tpu.vector_store %arg5[%c0_20, %c0_21], %19 {strides = array<i32>} : memref<2x16xf32, #tpu.memory_space<vmem>>, vector<2x16xf32>,
    } else {
    }
    return
  }
  func.func @transform_0(%arg0: i32, %arg1: i32, %arg2: i32) -> (i32, i32) {
    %c0_i32 = arith.constant 0 : i32
    %c0_i32_0 = arith.constant 0 : i32
    return %c0_i32, %arg2 : i32, i32
  }
  func.func @transform_1(%arg0: i32, %arg1: i32, %arg2: i32) -> (i32, i32, i32) {
    %c0_i32 = arith.constant 0 : i32
    return %arg0, %arg2, %arg1 : i32, i32, i32
  }
  func.func @transform_2(%arg0: i32, %arg1: i32, %arg2: i32) -> (i32, i32) {
    %c0_i32 = arith.constant 0 : i32
    return %arg0, %arg1 : i32, i32
  }
}

</mosaic_0001>

<bundles_post_ra>
// kernel: tpu_custom_call.1
= control target key start
LH: loop header
LB: loop body
LE: loop exit
PB: predicated region body
PF: predicated region fallthrough
CT: control target
= control target key end

     0   :  { %v277_v3 = vmov 0.0|0.0   ;;  %vm16_vm0 = vcmask 123904   ;;  %vm278_vm1 = vmmov 0   ;;  %v279_v11 = vmov 0.0   ;;  %s337_s0 = inlined_call_operand.vmem [shape: f32[1,32], index: 0, kind: input, shape index: {}]   ;;  %s338_s1 = inlined_call_operand.vmem [shape: f32[2,32,16], index: 1, kind: input, shape index: {}]   ;;  %s339_s2 = inlined_call_operand.hbm [shape: f32[2,16], index: 2, kind: output, shape index: {}]  }
   0x1   :  { %v20_v0 = vld [vmem:[%s338_s1] sm:$0xff]  ;;  %v21_v1 = vld [vmem:[%s338_s1 + $0x8] sm:$0xff]  ;;  %237 = vmatprep.subr.bf16.mxu0 %v277_v3  ;;  %243 = vmatprep.subr.bf16.mxu1 %v277_v3  ;;  %v22_v6 = vld [vmem:[%s338_s1 + $0x10] sm:$0xff]  ;;  %17 = vst.msk [vmem:[#allocation2] sm:$0x3] %vm16_vm0, %v279_v11 }
   0x2   :  { %v200_v2 = vld [vmem:[%s338_s1 + $0x20] sm:$0xff]  ;;  %v238_v4 = vpack.c.bf16 %v21_v1, %v20_v0  ;;  %v201_v5 = vld [vmem:[%s338_s1 + $0x28] sm:$0xff]  ;;  %v23_v7 = vld [vmem:[%s338_s1 + $0x18] sm:$0xff]  ;;  %223 = vmatprep.mubr.msk.f32.mxu0 %vm278_vm1, %v279_v11  ;;  %234 = vmatprep.mubr.msk.f32.mxu1 %vm278_vm1, %v279_v11 }
   0x3   :  { %v244_v8 = vpack.c.bf16 %v201_v5, %v200_v2  ;;  %v202_v9 = vld [vmem:[%s338_s1 + $0x30] sm:$0xff]  ;;  %v203_v10 = vld [vmem:[%s338_s1 + $0x38] sm:$0xff]  ;;  %v241_v12 = vpack.c.bf16 %v23_v7, %v22_v6 }
   0x4   :  { %239 = vmatpush3.bf16.msra.mxu0 %v238_v4 }
   0x5   :  { %7 = vsyncpa [#allocation4], 0  ;;  %245 = vmatpush3.bf16.msra.mxu1 %v244_v8  ;;  %240 = vmatprep.subr.bf16.mxu0 %v277_v3  ;;  %v247_v13 = vpack.c.bf16 %v203_v10, %v202_v9  ;;  %v18_v14 = vld [vmem:[%s337_s0] sm:$0x1]  ;;  %vm24_vm2 = vcmask 261120   ;;  %vm99_vm3 = vcmask 122880  }
   0x6   :  { %246 = vmatprep.subr.bf16.mxu1 %v277_v3  ;;  %s280_s1 = smov [#allocation3]  }
   0x7   :  { %s191_s27 = sshll.u32 %s280_s1, 4  ;;  %s192_s27 = int_to_ptr.vmem [resolvable:$true] %s191_s27 }
   0x8   :  { %242 = vmatpush3.bf16.msra.mxu0 %v241_v12  ;;  %v19_v15 = vld [vmem:[#allocation2] sm:$0x1]  ;;  %v101_v16 = vld [vmem:[#allocation2 + $0x1] sm:$0x1]  ;;  %s253_s0 = scalar_lea.vmem %s192_s27, 32  ;;  %p258_p1 = scmp.lt.s32.totalorder %s192_s27, %s192_s27 }
   0x9   :  { %248 = vmatpush3.bf16.msra.mxu1 %v247_v13  ;;  %p254_p0 = scmp.ne.s32.totalorder %s192_s27, %s253_s0  ;;  %p259_p2 = scmp.lt.s32.totalorder %s253_s0, %s253_s0 }
   0xb   :  { %224 = vmatmul.mubr.msk.f32.vlgmr.msra.gmra.mrb[0].mxu0 %vm24_vm2, %v18_v14  ;;  %p260_p3 = por %p259_p2, %p258_p1 }
   0xc   :  { %235 = vmatmul.mubr.msk.f32.vlgmr.msra.gmra.mrb[0].mxu1 %vm24_vm2, %v18_v14 }
   0xd   :  { %p261_p4 = pnand %p260_p3, %p254_p0 }
  0xde   :  { %v94_v17 = vpop.f32.mrb[0].mxu0 }
  0xdf   :  { %v98_v18 = vadd.f32 %v94_v17, %v19_v15  ;;  %v173_v19 = vpop.f32.mrb[0].mxu1  ;;  %v225_v20 = vpop.f32.mrb[1].mxu0 }
  0xe0   :  { %v177_v21 = vadd.f32 %v173_v19, %v101_v16  ;;  %v236_v22 = vpop.f32.mrb[1].mxu1 }
  0xe1   :  { %100 = vst.msk [vmem:[#allocation2] sm:$0x1] %vm99_vm3, %v98_v18 }
  0xe2   :  { %178 = vst.msk [vmem:[#allocation2 + $0x1] sm:$0x1] %vm99_vm3, %v177_v21 }
  0xe9   :  { %v182_v23 = vld [vmem:[#allocation2] sm:$0x3] }
  0xea   :  { %184 = vst.msk [vmem:[#allocation3] sm:$0x3] %vm16_vm0, %v182_v23 }
  0xeb   :  { %264 = shalt.err (!%p261_p4)
}
  0xec   :  { %s265_s30 = scalar_lea.hbm %s339_s2, 32 }
  0xed   :  { %p266_p5 = scmp.ne.s32.totalorder %s339_s2, %s265_s30  ;;  %p269_p6 = scmp.lt.u32.totalorder %s265_s30, %s339_s2 }
  0xef   :  { %p271_p7 = pnand %p269_p6, %p266_p5 }
  0xf1   :  { %274 = shalt.err (!%p271_p7)
}
  0xf2   :  { %194 = dma.vmem_to_hbm [thread:$0]  %s192_s27, 32, %s339_s2, [#allocation4]  }
  0xf3   :  { %275 = dma.done.wait [#allocation4], 32  }
  0xf4   :  { %276 = vsyncadd [#allocation4], 4294967264 }
  0xf5   :  { %198 = vsyncpa [#allocation4], 1 }

</bundles_post_ra>
